<compile_context>
chip_gen: v6e
topology: v6e:2x2x1
jax: 0.10.0
libtpu: 0.0.40
codegen_flags: <defaults>
</compile_context>

<pallas_src>
import functools

import jax
import jax.numpy as jnp
from jax import lax
from jax.experimental import pallas as pl
from jax.experimental.pallas import tpu as pltpu


# ----------------------------------------------------------------------------
# Fused Pallas kernel: cosine-similarity grid + kornia.crop_and_resize
# ----------------------------------------------------------------------------
def _fused_grid_kernel(p_ref, r_ref, rw_ref, cw_ref, o_ref, *, n_chan, embd_dim):
    # p_ref : (P, C*D)  channel-folded p embeddings (f32)
    # r_ref : (R, C*D)  channel-folded r embeddings (f32)
    # rw_ref: (OUT_W, P) bilinear weights over the p (row) axis
    # cw_ref: (OUT_H, R) bilinear weights over the r (col) axis
    # o_ref : (OUT_H, C*OUT_W) channel-folded output (f32)
    p = p_ref[...]
    r = r_ref[...]
    rw = rw_ref[...].astype(jnp.bfloat16)
    cw = cw_ref[...].astype(jnp.bfloat16)

    def normalize(x):
        # torch.nn.CosineSimilarity(eps=1e-6): x / max(|x|, 1e-6), here as a per-vector
        # rsqrt guard (EUP).  Elementwise math stays f32 (v5e has no bf16 VPU); only the
        # MXU operands are cast to bf16.
        parts = []
        for c in range(n_chan):
            xc = x[:, c * embd_dim:(c + 1) * embd_dim]
            inv = lax.rsqrt(
                jnp.maximum(jnp.sum(xc * xc, axis=-1, keepdims=True), 1e-12))
            parts.append(xc * inv)
        return jnp.concatenate(parts, axis=-1).astype(jnp.bfloat16)

    p_hat = normalize(p)                                              # (P, C*D) bf16
    r_hat = normalize(r)                                              # (R, C*D) bf16

    # Stage 1: bilinear resize folded over the token axes — one matmul per side covers
    # all channels (contraction over P / R, lane-dense C*D output).
    pm = lax.dot_general(rw, p_hat, (((1,), (0,)), ((), ())),
                         preferred_element_type=jnp.float32)          # (OUT_W, C*D)
    rm = lax.dot_general(cw, r_hat, (((1,), (0,)), ((), ())),
                         preferred_element_type=jnp.float32)          # (OUT_H, C*D)

    # Stage 2: per-channel contraction over D == the cosine dot products.  The (P, R)
    # similarity grid never exists.
    outs = []
    for c in range(n_chan):
        rm_c = rm[:, c * embd_dim:(c + 1) * embd_dim]                 # (OUT_H, D)
        pm_c = pm[:, c * embd_dim:(c + 1) * embd_dim]                 # (OUT_W, D)
        outs.append(lax.dot_general(rm_c, pm_c, (((1,), (1,)), ((), ())),
                                    preferred_element_type=jnp.float32))
    # Single lane-dense store of the whole (OUT_H, C*OUT_W) block.
    o_ref[...] = jnp.concatenate(outs, axis=-1)


def fused_grid_crop_resize(p_emb, r_emb, row_w, col_w, *, n_chan, embd_dim):
    """p_emb: (B,P,C*D), r_emb: (B,R,C*D), row_w: (B,OUT_W,P), col_w: (B,OUT_H,R)
       -> (B, OUT_H, C*OUT_W) float32 (channel-folded output)."""
    B, P, CD = p_emb.shape
    R = r_emb.shape[1]
    OUT_W = row_w.shape[1]
    OUT_H = col_w.shape[1]

    kernel = functools.partial(_fused_grid_kernel, n_chan=n_chan, embd_dim=embd_dim)

    flops = B * (2 * OUT_W * P * CD + 2 * OUT_H * R * CD
                 + 2 * n_chan * OUT_H * OUT_W * embd_dim)
    bytes_accessed = 4 * (p_emb.size + r_emb.size + row_w.size + col_w.size
                          + B * OUT_H * n_chan * OUT_W)

    return pl.pallas_call(
        kernel,
        out_shape=jax.ShapeDtypeStruct((B, OUT_H, n_chan * OUT_W), jnp.float32),
        grid=(B,),
        in_specs=[
            pl.BlockSpec((None, P, CD), lambda b: (b, 0, 0)),
            pl.BlockSpec((None, R, CD), lambda b: (b, 0, 0)),
            pl.BlockSpec((None, OUT_W, P), lambda b: (b, 0, 0)),
            pl.BlockSpec((None, OUT_H, R), lambda b: (b, 0, 0)),
        ],
        out_specs=pl.BlockSpec((None, OUT_H, n_chan * OUT_W), lambda b: (b, 0, 0)),
        compiler_params=pltpu.CompilerParams(dimension_semantics=("parallel",)),
        cost_estimate=pl.CostEstimate(flops=flops,
                                      transcendentals=B * n_chan * (P + R),
                                      bytes_accessed=bytes_accessed),
    )(p_emb, r_emb, row_w, col_w)


# ----------------------------------------------------------------------------
# Glue (plain JAX): embeddings, dropout, bilinear resize-weight matrices
# ----------------------------------------------------------------------------
def _resize_weights(lens, out_size, src_size, valid_len):
    """Per-batch (OUT, src_size) bilinear sampling matrices.

    kornia.crop_and_resize maps dst sample k to src coordinate k * l / (OUT-1)
    (perspective transform from box corners to [0, OUT-1]).  Taps at indices >=
    `valid_len` (the reference's dynamic max length) get zero weight, matching
    grid_sample zero padding of the dynamically-sliced reference grid.
    """
    idx = jnp.arange(src_size, dtype=jnp.float32)[None, :]
    vmax = valid_len.astype(jnp.float32)

    def one(l):
        coords = jnp.arange(out_size, dtype=jnp.float32) * (
            l.astype(jnp.float32) / float(out_size - 1))
        i0 = jnp.floor(coords)
        frac = coords - i0
        w0 = jnp.where(idx == i0[:, None], 1.0 - frac[:, None], 0.0)
        w1 = jnp.where(idx == i0[:, None] + 1.0, frac[:, None], 0.0)
        w = w0 + w1
        return jnp.where(idx < vmax, w, 0.0)

    return jax.vmap(one)(lens).astype(jnp.float32)


def _dropout(x, rate, key):
    if rate <= 0.0:
        return x
    keep = 1.0 - rate
    mask = jax.random.bernoulli(key, keep, x.shape)
    return jnp.where(mask, x / keep, jnp.zeros_like(x))


def init_params(hyps, key):
    k1, k2, k3 = jax.random.split(key, 3)
    V, D = hyps["VOCAB_SIZE"], hyps["EMBD_DIM"]
    return {
        "wordEmbd": jax.random.normal(k1, (V, D), jnp.float32),
        "wordEmbd2": jax.random.normal(k2, (V, D), jnp.float32),
        "wordEmbd3": jax.random.normal(k3, (V, D), jnp.float32),
    }


def similarity_grid_forward(params, hyps, p, p_len, r, r_len, batch_size,
                            dropout, rng):
    D = hyps["EMBD_DIM"]
    C = 3
    B = p.shape[0]
    P_MAX = p.shape[1]
    R_MAX = r.shape[1]

    # Traced (no host sync, no shape-dependent recompiles); only used to mask resize taps.
    max_p_len = jnp.max(p_len)
    max_r_len = jnp.max(r_len)

    tables = (params["wordEmbd"], params["wordEmbd2"], params["wordEmbd3"])
    # Channel-folded embeddings: (B, seq, 3*D); channel c lives in lanes [c*D, (c+1)*D).
    p_emb = jnp.concatenate([jnp.take(t, p, axis=0) for t in tables], axis=-1)
    r_emb = jnp.concatenate([jnp.take(t, r, axis=0) for t in tables], axis=-1)

    kp, kr = jax.random.split(rng)
    p_emb = _dropout(p_emb, dropout, kp)
    r_emb = _dropout(r_emb, dropout, kr)

    # kornia.crop_and_resize(grid, boxes, [IMG_WIDTH, IMG_HEIGHT]): size arg is (h, w).
    out_h = hyps["IMG_WIDTH"]
    out_w = hyps["IMG_HEIGHT"]
    # The reference boxes use x<-p_len, y<-r_len, which (w.r.t. the NCHW grid with
    # H = p axis, W = r axis) swaps the scaling: output columns sample the p axis scaled
    # by r_len, output rows sample the r axis scaled by p_len.  Reproduced faithfully.
    row_w = _resize_weights(r_len, out_w, P_MAX, max_p_len)   # (B, OUT_W, P_MAX)
    col_w = _resize_weights(p_len, out_h, R_MAX, max_r_len)   # (B, OUT_H, R_MAX)

    out_wide = fused_grid_crop_resize(p_emb, r_emb, row_w, col_w,
                                      n_chan=C, embd_dim=D)    # (B, OUT_H, C*OUT_W)
    grid_proc = out_wide.reshape(B, out_h, C, out_w).transpose(0, 2, 1, 3)

    # TODO(synk): resnet152(grid_proc) + sigmoid(Linear(1000,1)) head omitted (see header).
    return grid_proc


# ----------------------------------------------------------------------------
if __name__ == "__main__":
    hyps = {"VOCAB_SIZE": 50, "EMBD_DIM": 32, "IMG_WIDTH": 32, "IMG_HEIGHT": 32}

    key = jax.random.PRNGKey(0)
    k_params, k_p, k_r, k_drop = jax.random.split(key, 4)

    params = init_params(hyps, k_params)

    batch_size = 2
    P_MAX, R_MAX = 16, 16
    p = jax.random.randint(k_p, (batch_size, P_MAX), 0, hyps["VOCAB_SIZE"], jnp.int32)
    r = jax.random.randint(k_r, (batch_size, R_MAX), 0, hyps["VOCAB_SIZE"], jnp.int32)
    p_len = jnp.array([16, 10], dtype=jnp.int32)
    r_len = jnp.array([12, 8], dtype=jnp.int32)

    @jax.jit
    def run(p, p_len, r, r_len, rng):
        return similarity_grid_forward(params, hyps, p, p_len, r, r_len,
                                       batch_size, dropout=0.0, rng=rng)

    out = run(p, p_len, r, r_len, k_drop)
    jax.block_until_ready(out)
    assert out.shape == (batch_size, 3, hyps["IMG_WIDTH"], hyps["IMG_HEIGHT"])
    print("KERNEL_OK")
</pallas_src>

<mosaic_0001>
module attributes {stable_mosaic.version = 11 : i64} {
  func.func @_fused_grid_kernel(%arg0: i32, %arg1: memref<1x16x96xf32, #tpu.memory_space<vmem>>, %arg2: memref<1x16x96xf32, #tpu.memory_space<vmem>>, %arg3: memref<1x32x16xf32, #tpu.memory_space<vmem>>, %arg4: memref<1x32x16xf32, #tpu.memory_space<vmem>>, %arg5: memref<1x32x96xf32, #tpu.memory_space<vmem>>) attributes {dimension_semantics = [#tpu.dimension_semantics<parallel>], iteration_bounds = array<i64: 2>, scalar_prefetch = 0 : i64, scratch_operands = 0 : i64, tpu.core_type = #tpu.core_type<tc>, window_params = [{transform_indices = @transform_0, window_bounds = array<i64: 1, 16, 96>}, {transform_indices = @transform_1, window_bounds = array<i64: 1, 16, 96>}, {transform_indices = @transform_2, window_bounds = array<i64: 1, 32, 16>}, {transform_indices = @transform_3, window_bounds = array<i64: 1, 32, 16>}, {transform_indices = @transform_4, window_bounds = array<i64: 1, 32, 96>}]} {
    %c0 = arith.constant 0 : index
    %c0_0 = arith.constant 0 : index
    %c0_1 = arith.constant 0 : index
    %0 = vector.load %arg1[%c0, %c0_0, %c0_1] : memref<1x16x96xf32, #tpu.memory_space<vmem>>, vector<1x16x96xf32>
    %1 = vector.shape_cast %0 : vector<1x16x96xf32> to vector<16x96xf32>
    %c0_2 = arith.constant 0 : index
    %c0_3 = arith.constant 0 : index
    %c0_4 = arith.constant 0 : index
    %2 = vector.load %arg2[%c0_2, %c0_3, %c0_4] : memref<1x16x96xf32, #tpu.memory_space<vmem>>, vector<1x16x96xf32>
    %3 = vector.shape_cast %2 : vector<1x16x96xf32> to vector<16x96xf32>
    %c0_5 = arith.constant 0 : index
    %c0_6 = arith.constant 0 : index
    %c0_7 = arith.constant 0 : index
    %4 = vector.load %arg3[%c0_5, %c0_6, %c0_7] : memref<1x32x16xf32, #tpu.memory_space<vmem>>, vector<1x32x16xf32>
    %5 = vector.shape_cast %4 : vector<1x32x16xf32> to vector<32x16xf32>
    %6 = arith.truncf %5 : vector<32x16xf32> to vector<32x16xbf16>
    %c0_8 = arith.constant 0 : index
    %c0_9 = arith.constant 0 : index
    %c0_10 = arith.constant 0 : index
    %7 = vector.load %arg4[%c0_8, %c0_9, %c0_10] : memref<1x32x16xf32, #tpu.memory_space<vmem>>, vector<1x32x16xf32>
    %8 = vector.shape_cast %7 : vector<1x32x16xf32> to vector<32x16xf32>
    %9 = arith.truncf %8 : vector<32x16xf32> to vector<32x16xbf16>
    %10 = vector.extract_strided_slice %1 {offsets = [0, 0], sizes = [16, 32], strides = [1, 1]} : vector<16x96xf32> to vector<16x32xf32>
    %11 = arith.mulf %10, %10 : vector<16x32xf32>
    %cst = arith.constant dense<0.000000e+00> : vector<16xf32>
    %12 = vector.multi_reduction <add>, %11, %cst [1] : vector<16x32xf32> to vector<16xf32>
    %13 = vector.shape_cast %12 : vector<16xf32> to vector<16x1xf32>
    %cst_11 = arith.constant 9.99999996E-13 : f32
    %14 = vector.broadcast %cst_11 : f32 to vector<16x1xf32>
    %15 = arith.maximumf %13, %14 : vector<16x1xf32>
    %16 = math.rsqrt %15 : vector<16x1xf32>
    %17 = vector.broadcast %16 : vector<16x1xf32> to vector<16x32xf32>
    %18 = arith.mulf %10, %17 : vector<16x32xf32>
    %19 = vector.extract_strided_slice %1 {offsets = [0, 32], sizes = [16, 32], strides = [1, 1]} : vector<16x96xf32> to vector<16x32xf32>
    %20 = arith.mulf %19, %19 : vector<16x32xf32>
    %cst_12 = arith.constant dense<0.000000e+00> : vector<16xf32>
    %21 = vector.multi_reduction <add>, %20, %cst_12 [1] : vector<16x32xf32> to vector<16xf32>
    %22 = vector.shape_cast %21 : vector<16xf32> to vector<16x1xf32>
    %cst_13 = arith.constant 9.99999996E-13 : f32
    %23 = vector.broadcast %cst_13 : f32 to vector<16x1xf32>
    %24 = arith.maximumf %22, %23 : vector<16x1xf32>
    %25 = math.rsqrt %24 : vector<16x1xf32>
    %26 = vector.broadcast %25 : vector<16x1xf32> to vector<16x32xf32>
    %27 = arith.mulf %19, %26 : vector<16x32xf32>
    %28 = vector.extract_strided_slice %1 {offsets = [0, 64], sizes = [16, 32], strides = [1, 1]} : vector<16x96xf32> to vector<16x32xf32>
    %29 = arith.mulf %28, %28 : vector<16x32xf32>
    %cst_14 = arith.constant dense<0.000000e+00> : vector<16xf32>
    %30 = vector.multi_reduction <add>, %29, %cst_14 [1] : vector<16x32xf32> to vector<16xf32>
    %31 = vector.shape_cast %30 : vector<16xf32> to vector<16x1xf32>
    %cst_15 = arith.constant 9.99999996E-13 : f32
    %32 = vector.broadcast %cst_15 : f32 to vector<16x1xf32>
    %33 = arith.maximumf %31, %32 : vector<16x1xf32>
    %34 = math.rsqrt %33 : vector<16x1xf32>
    %35 = vector.broadcast %34 : vector<16x1xf32> to vector<16x32xf32>
    %36 = arith.mulf %28, %35 : vector<16x32xf32>
    %37 = tpu.concatenate %18, %27, %36 in 1 : vector<16x32xf32>, vector<16x32xf32>, vector<16x32xf32> -> vector<16x96xf32>
    %38 = arith.truncf %37 : vector<16x96xf32> to vector<16x96xbf16>
    %39 = vector.extract_strided_slice %3 {offsets = [0, 0], sizes = [16, 32], strides = [1, 1]} : vector<16x96xf32> to vector<16x32xf32>
    %40 = arith.mulf %39, %39 : vector<16x32xf32>
    %cst_16 = arith.constant dense<0.000000e+00> : vector<16xf32>
    %41 = vector.multi_reduction <add>, %40, %cst_16 [1] : vector<16x32xf32> to vector<16xf32>
    %42 = vector.shape_cast %41 : vector<16xf32> to vector<16x1xf32>
    %cst_17 = arith.constant 9.99999996E-13 : f32
    %43 = vector.broadcast %cst_17 : f32 to vector<16x1xf32>
    %44 = arith.maximumf %42, %43 : vector<16x1xf32>
    %45 = math.rsqrt %44 : vector<16x1xf32>
    %46 = vector.broadcast %45 : vector<16x1xf32> to vector<16x32xf32>
    %47 = arith.mulf %39, %46 : vector<16x32xf32>
    %48 = vector.extract_strided_slice %3 {offsets = [0, 32], sizes = [16, 32], strides = [1, 1]} : vector<16x96xf32> to vector<16x32xf32>
    %49 = arith.mulf %48, %48 : vector<16x32xf32>
    %cst_18 = arith.constant dense<0.000000e+00> : vector<16xf32>
    %50 = vector.multi_reduction <add>, %49, %cst_18 [1] : vector<16x32xf32> to vector<16xf32>
    %51 = vector.shape_cast %50 : vector<16xf32> to vector<16x1xf32>
    %cst_19 = arith.constant 9.99999996E-13 : f32
    %52 = vector.broadcast %cst_19 : f32 to vector<16x1xf32>
    %53 = arith.maximumf %51, %52 : vector<16x1xf32>
    %54 = math.rsqrt %53 : vector<16x1xf32>
    %55 = vector.broadcast %54 : vector<16x1xf32> to vector<16x32xf32>
    %56 = arith.mulf %48, %55 : vector<16x32xf32>
    %57 = vector.extract_strided_slice %3 {offsets = [0, 64], sizes = [16, 32], strides = [1, 1]} : vector<16x96xf32> to vector<16x32xf32>
    %58 = arith.mulf %57, %57 : vector<16x32xf32>
    %cst_20 = arith.constant dense<0.000000e+00> : vector<16xf32>
    %59 = vector.multi_reduction <add>, %58, %cst_20 [1] : vector<16x32xf32> to vector<16xf32>
    %60 = vector.shape_cast %59 : vector<16xf32> to vector<16x1xf32>
    %cst_21 = arith.constant 9.99999996E-13 : f32
    %61 = vector.broadcast %cst_21 : f32 to vector<16x1xf32>
    %62 = arith.maximumf %60, %61 : vector<16x1xf32>
    %63 = math.rsqrt %62 : vector<16x1xf32>
    %64 = vector.broadcast %63 : vector<16x1xf32> to vector<16x32xf32>
    %65 = arith.mulf %57, %64 : vector<16x32xf32>
    %66 = tpu.concatenate %47, %56, %65 in 1 : vector<16x32xf32>, vector<16x32xf32>, vector<16x32xf32> -> vector<16x96xf32>
    %67 = arith.truncf %66 : vector<16x96xf32> to vector<16x96xbf16>
    %cst_22 = arith.constant dense<0.000000e+00> : vector<32x96xf32>
    %68 = tpu.matmul %6, %38, %cst_22 {dimension_numbers = #tpu.dot_dimension_numbers<[1], [0], [0], [1], [0, 0, 1, 1], [], []>} : vector<32x16xbf16>, vector<16x96xbf16>, vector<32x96xf32> -> vector<32x96xf32>
    %cst_23 = arith.constant dense<0.000000e+00> : vector<32x96xf32>
    %69 = tpu.matmul %9, %67, %cst_23 {dimension_numbers = #tpu.dot_dimension_numbers<[1], [0], [0], [1], [0, 0, 1, 1], [], []>} : vector<32x16xbf16>, vector<16x96xbf16>, vector<32x96xf32> -> vector<32x96xf32>
    %70 = vector.extract_strided_slice %69 {offsets = [0, 0], sizes = [32, 32], strides = [1, 1]} : vector<32x96xf32> to vector<32x32xf32>
    %71 = vector.extract_strided_slice %68 {offsets = [0, 0], sizes = [32, 32], strides = [1, 1]} : vector<32x96xf32> to vector<32x32xf32>
    %cst_24 = arith.constant dense<0.000000e+00> : vector<32x32xf32>
    %72 = tpu.matmul %70, %71, %cst_24 {dimension_numbers = #tpu.dot_dimension_numbers<[1], [1], [0], [0], [0, 0, 1, 0], [], []>} : vector<32x32xf32>, vector<32x32xf32>, vector<32x32xf32> -> vector<32x32xf32>
    %73 = vector.extract_strided_slice %69 {offsets = [0, 32], sizes = [32, 32], strides = [1, 1]} : vector<32x96xf32> to vector<32x32xf32>
    %74 = vector.extract_strided_slice %68 {offsets = [0, 32], sizes = [32, 32], strides = [1, 1]} : vector<32x96xf32> to vector<32x32xf32>
    %cst_25 = arith.constant dense<0.000000e+00> : vector<32x32xf32>
    %75 = tpu.matmul %73, %74, %cst_25 {dimension_numbers = #tpu.dot_dimension_numbers<[1], [1], [0], [0], [0, 0, 1, 0], [], []>} : vector<32x32xf32>, vector<32x32xf32>, vector<32x32xf32> -> vector<32x32xf32>
    %76 = vector.extract_strided_slice %69 {offsets = [0, 64], sizes = [32, 32], strides = [1, 1]} : vector<32x96xf32> to vector<32x32xf32>
    %77 = vector.extract_strided_slice %68 {offsets = [0, 64], sizes = [32, 32], strides = [1, 1]} : vector<32x96xf32> to vector<32x32xf32>
    %cst_26 = arith.constant dense<0.000000e+00> : vector<32x32xf32>
    %78 = tpu.matmul %76, %77, %cst_26 {dimension_numbers = #tpu.dot_dimension_numbers<[1], [1], [0], [0], [0, 0, 1, 0], [], []>} : vector<32x32xf32>, vector<32x32xf32>, vector<32x32xf32> -> vector<32x32xf32>
    %79 = tpu.concatenate %72, %75, %78 in 1 : vector<32x32xf32>, vector<32x32xf32>, vector<32x32xf32> -> vector<32x96xf32>
    %c0_27 = arith.constant 0 : index
    %c0_28 = arith.constant 0 : index
    %c0_29 = arith.constant 0 : index
    %80 = vector.load %arg5[%c0_27, %c0_28, %c0_29] : memref<1x32x96xf32, #tpu.memory_space<vmem>>, vector<1x32x96xf32>
    %81 = vector.shape_cast %80 : vector<1x32x96xf32> to vector<32x96xf32>
    %82 = vector.shape_cast %79 : vector<32x96xf32> to vector<1x32x96xf32>
    tpu.vector_store %arg5[%c0_27, %c0_28, %c0_29], %82 {strides = array<i32>} : memref<1x32x96xf32, #tpu.memory_space<vmem>>, vector<1x32x96xf32>,
    return
  }
  func.func @transform_0(%arg0: i32) -> (i32, i32, i32) {
    %c0_i32 = arith.constant 0 : i32
    %c0_i32_0 = arith.constant 0 : i32
    %c0_i32_1 = arith.constant 0 : i32
    return %arg0, %c0_i32, %c0_i32_0 : i32, i32, i32
  }
  func.func @transform_1(%arg0: i32) -> (i32, i32, i32) {
    %c0_i32 = arith.constant 0 : i32
    %c0_i32_0 = arith.constant 0 : i32
    %c0_i32_1 = arith.constant 0 : i32
    return %arg0, %c0_i32, %c0_i32_0 : i32, i32, i32
  }
  func.func @transform_2(%arg0: i32) -> (i32, i32, i32) {
    %c0_i32 = arith.constant 0 : i32
    %c0_i32_0 = arith.constant 0 : i32
    %c0_i32_1 = arith.constant 0 : i32
    return %arg0, %c0_i32, %c0_i32_0 : i32, i32, i32
  }
  func.func @transform_3(%arg0: i32) -> (i32, i32, i32) {
    %c0_i32 = arith.constant 0 : i32
    %c0_i32_0 = arith.constant 0 : i32
    %c0_i32_1 = arith.constant 0 : i32
    return %arg0, %c0_i32, %c0_i32_0 : i32, i32, i32
  }
  func.func @transform_4(%arg0: i32) -> (i32, i32, i32) {
    %c0_i32 = arith.constant 0 : i32
    %c0_i32_0 = arith.constant 0 : i32
    %c0_i32_1 = arith.constant 0 : i32
    return %arg0, %c0_i32, %c0_i32_0 : i32, i32, i32
  }
}

</mosaic_0001>

<bundles_post_ra>
// kernel: run.1
= control target key start
LH: loop header
LB: loop body
LE: loop exit
PB: predicated region body
PF: predicated region fallthrough
CT: control target
= control target key end

     0   :  { %s1186_s15 = smov 0   ;;  %s1361_s0 = inlined_call_operand.vmem [shape: f32[2,16,96], index: 0, kind: input, shape index: {}]   ;;  %s1362_s1 = inlined_call_operand.vmem [shape: f32[2,16,96], index: 1, kind: input, shape index: {}]   ;;  %s1363_s2 = inlined_call_operand.vmem [shape: f32[2,32,16], index: 2, kind: input, shape index: {}]   ;;  %s1364_s3 = inlined_call_operand.vmem [shape: f32[2,32,16], index: 3, kind: input, shape index: {}]   ;;  %s1365_s4 = inlined_call_operand.vmem [shape: f32[2,32,96], index: 4, kind: output, shape index: {}]  }
   0x1 LB: > { %s981_s16 = sadd.s32 4294967295, %s1156_s15   ;;  %p985_p0 = scmp.ge.s32.totalorder %s1156_s15, 1  ;;  %s1156_s15 = sphi %s1186_s15, %s14_s15  }
   0x2   : > { %p192_p1 = scmp.lt.s32.totalorder %s1156_s15, 3 }
   0x4   : > { %p193_p2 = pnand %p985_p0, %p192_p1 }
   0x5   : > { %p233_p3 = scmp.lt.s32.totalorder (!%p193_p2), %s981_s16, 1  ;;  %s1158_s24 = smov (!%p193_p2), 96  }
   0x6   : > { %196 = sbr.rel (%p193_p2) target bundleno = 960 (0x3c0), region = 36  ;;  %s1159_s25 = smov (!%p193_p2), 64  }
   0x7   : > { %s1160_s7 = smov (!%p193_p2), 32  }
   0xb   : > { %s1367_s16 = smov (!%p233_p3, %s981_s16), 1  ;;  %vm277_vm0 = vcmask 261120   ;;  %vm391_vm1 = vcmask 130048   ;;  %vm330_vm2 = vcmask 523264   ;;  %vm885_vm3 = vcmask 785408  }
   0xc   : > { %s1026_s17 = sshll.u32 %s1367_s16, 4  ;;  %s1240_s26 = sshll.u32 %s1367_s16, 5 }
   0xd   : > { %s237_s20 = scalar_lea.vmem %s1361_s0, %s1026_s17  ;;  %s242_s23 = scalar_lea.vmem %s1362_s1, %s1026_s17 }
   0xe   : > { %v1200_v0 = vld [vmem:[%s237_s20] sm:$0xff]  ;;  %v1202_v1 = vld [vmem:[%s237_s20 + $0x8] sm:$0xff]  ;;  %s1246_s29 = scalar_lea.vmem %s1363_s2, %s1240_s26  ;;  %s1262_s6 = scalar_lea.vmem %s1364_s3, %s1240_s26 }
   0xf   : > { %v275_v2 = vmul.f32 %v1200_v0, %v1200_v0  ;;  %v276_v3 = vmul.f32 %v1202_v1, %v1202_v1  ;;  %v1213_v4 = vld [vmem:[%s242_s23] sm:$0xff]  ;;  %v1215_v5 = vld [vmem:[%s242_s23 + $0x8] sm:$0xff]  ;;  %s257_s10 = scalar_lea.vmem %s1365_s4, %s1240_s26 }
  0x10   : > { %v334_v6 = vmul.f32 %v1213_v4, %v1213_v4  ;;  %v335_v7 = vmul.f32 %v1215_v5, %v1215_v5  ;;  %v263_v28 = vld [vmem:[%s1246_s29] sm:$0xff]  ;;  %v264_v29 = vld [vmem:[%s1246_s29 + $0x8] sm:$0xff] }
  0x11   : > { %292 = vrot.lane.b32.xlu0 %v275_v2, %s1158_s24  ;;  %310 = vrot.lane.b32.xlu1 %v275_v2, %s1159_s25  ;;  %v278_v8 = vsel %vm277_vm0, %v275_v2, 0.0  ;;  %v281_v9 = vsel %vm277_vm0, %v276_v3, 0.0  ;;  %v267_v30 = vpack.c.bf16 %v264_v29, %v263_v28 }
  0x12   : > { %v336_v14 = vsel %vm277_vm0, %v334_v6, 0.0  ;;  %v339_v22 = vsel %vm277_vm0, %v335_v7, 0.0 }
  0x13   : > { %1063 = vmatprep.mubr.msk.bf16.mxu1 %vm391_vm1, %v267_v30 }
  0x15   : > { %294 = vrot.lane.b32.xlu0 %v276_v3, %s1158_s24  ;;  %312 = vrot.lane.b32.xlu1 %v276_v3, %s1159_s25 }
  0x19   : > { %350 = vrot.lane.b32.xlu0 %v334_v6, %s1158_s24  ;;  %352 = vrot.lane.b32.xlu1 %v335_v7, %s1158_s24 }
  0x1d   : > { %368 = vrot.lane.b32.xlu0 %v334_v6, %s1159_s25  ;;  %370 = vrot.lane.b32.xlu1 %v335_v7, %s1159_s25 }
  0x3c   : > { %279 = vadd.xlane.f32.xlu0 %v278_v8 }
  0x41   : > { %282 = vadd.xlane.f32.xlu1 %v281_v9 }
  0x83   : > { %v293_v10 = vpop.permute.xlu0 %292  ;;  %v311_v11 = vpop.permute.xlu1 %310 }
  0x84   : > { %v298_v12 = vsel %vm277_vm0, %v293_v10, 0.0  ;;  %v316_v13 = vsel %vm277_vm0, %v311_v11, 0.0  ;;  %v266_v11 = vld [vmem:[%s1246_s29 + $0x18] sm:$0xff] }
  0x85   : > { %299 = vadd.xlane.f32.xlu0 %v298_v12  ;;  %317 = vadd.xlane.f32.xlu1 %v316_v13 }
  0x87   : > { %v295_v15 = vpop.permute.xlu0 %294  ;;  %v313_v16 = vpop.permute.xlu1 %312 }
  0x88   : > { %v301_v17 = vsel %vm277_vm0, %v295_v15, 0.0  ;;  %v319_v18 = vsel %vm277_vm0, %v313_v16, 0.0  ;;  %v270_v15 = vld [vmem:[%s1262_s6 + $0x8] sm:$0xff] }
  0x89   : > { %302 = vadd.xlane.f32.xlu0 %v301_v17  ;;  %337 = vadd.xlane.f32.xlu1 %v336_v14  ;;  %v269_v14 = vld [vmem:[%s1262_s6] sm:$0xff] }
  0x8b   : > { %v351_v19 = vpop.permute.xlu0 %350  ;;  %v353_v21 = vpop.permute.xlu1 %352 }
  0x8c   : > { %v356_v20 = vsel %vm277_vm0, %v351_v19, 0.0  ;;  %v359_v25 = vsel %vm277_vm0, %v353_v21, 0.0  ;;  %v273_v19 = vpack.c.bf16 %v270_v15, %v269_v14 }
  0x8d   : > { %320 = vadd.xlane.f32.xlu0 %v319_v18  ;;  %357 = vadd.xlane.f32.xlu1 %v356_v20 }
  0x8f   : > { %v369_v23 = vpop.permute.xlu0 %368  ;;  %v371_v26 = vpop.permute.xlu1 %370 }
  0x90   : > { %v374_v24 = vsel %vm277_vm0, %v369_v23, 0.0  ;;  %v377_v27 = vsel %vm277_vm0, %v371_v26, 0.0 }
  0x91   : > { %340 = vadd.xlane.f32.xlu0 %v339_v22  ;;  %375 = vadd.xlane.f32.xlu1 %v374_v24 }
  0x95   : > { %360 = vadd.xlane.f32.xlu0 %v359_v25 }
  0x99   : > { %378 = vadd.xlane.f32.xlu0 %v377_v27 }
  0xc5   : > { %v280_v31 = vpop.xlane.xlu0 %279 }
  0xc6   : > { %v284_v33 = vmax.f32 %v280_v31, 1e-12 }
  0xc8   : > { %1126 = vrsqrt.f32 %v284_v33  ;;  %v272_v33 = vld [vmem:[%s1262_s6 + $0x18] sm:$0xff] }
  0xca   : > { %v283_v32 = vpop.xlane.xlu1 %282 }
  0xcb   : > { %v285_v36 = vmax.f32 %v283_v32, 1e-12  ;;  %v271_v32 = vld [vmem:[%s1262_s6 + $0x10] sm:$0xff] }
  0xd5   : > { %v1127_v51 = vpop.eup %1126 }
  0xd6   : > { %v288_v61 = vmul.f32 %v1127_v51, %v1200_v0 }
 0x10e   : > { %v300_v34 = vpop.xlane.xlu0 %299  ;;  %v318_v35 = vpop.xlane.xlu1 %317 }
 0x10f   : > { %v304_v37 = vmax.f32 %v300_v34, 1e-12  ;;  %v322_v38 = vmax.f32 %v318_v35, 1e-12  ;;  %v274_v35 = vpack.c.bf16 %v272_v33, %v271_v32 }
 0x111   : > { %1128 = vrsqrt.f32 %v304_v37 }
 0x112   : > { %v303_v39 = vpop.xlane.xlu0 %302  ;;  %v338_v40 = vpop.xlane.xlu1 %337  ;;  %1130 = vrsqrt.f32 %v285_v36 }
 0x113   : > { %v305_v41 = vmax.f32 %v303_v39, 1e-12  ;;  %1132 = vrsqrt.f32 %v322_v38  ;;  %v342_v45 = vmax.f32 %v338_v40, 1e-12 }
 0x115   : > { %1134 = vrsqrt.f32 %v305_v41 }
 0x116   : > { %v321_v42 = vpop.xlane.xlu0 %320  ;;  %v358_v43 = vpop.xlane.xlu1 %357 }
 0x117   : > { %v323_v44 = vmax.f32 %v321_v42, 1e-12  ;;  %v362_v46 = vmax.f32 %v358_v43, 1e-12 }
 0x119   : > { %1136 = vrsqrt.f32 %v323_v44 }
 0x11a   : > { %v341_v47 = vpop.xlane.xlu0 %340  ;;  %v376_v48 = vpop.xlane.xlu1 %375  ;;  %1138 = vrsqrt.f32 %v342_v45 }
 0x11b   : > { %v343_v49 = vmax.f32 %v341_v47, 1e-12  ;;  %v380_v50 = vmax.f32 %v376_v48, 1e-12  ;;  %1140 = vrsqrt.f32 %v362_v46 }
 0x11d   : > { %1142 = vrsqrt.f32 %v343_v49 }
 0x11e   : > { %v361_v52 = vpop.xlane.xlu0 %360  ;;  %v1129_v53 = vpop.eup %1128  ;;  %1144 = vrsqrt.f32 %v380_v50 }
 0x11f   : > { %v363_v54 = vmax.f32 %v361_v52, 1e-12  ;;  %v1131_v55 = vpop.eup %1130  ;;  %v308_v59 = vmul.f32 %v1129_v53, %v1200_v0 }
 0x120   : > { %v1133_v56 = vpop.eup %1132  ;;  %v289_v62 = vmul.f32 %v1131_v55, %v1202_v1 }
 0x121   : > { %1146 = vrsqrt.f32 %v363_v54  ;;  %v326_v2 = vmul.f32 %v1133_v56, %v1200_v0  ;;  %v328_v6 = vsel %vm277_vm0, %v288_v61, %v308_v59  ;;  %v265_v0 = vld [vmem:[%s1246_s29 + $0x10] sm:$0xff] }
 0x122   : > { %v1135_v57 = vpop.eup %1134  ;;  %v379_v58 = vpop.xlane.xlu0 %378  ;;  %v268_v17 = vpack.c.bf16 %v266_v11, %v265_v0 }
 0x123   : > { %v381_v60 = vmax.f32 %v379_v58, 1e-12  ;;  %v309_v63 = vmul.f32 %v1135_v57, %v1202_v1  ;;  %v331_v9 = vsel %vm330_vm2, %v328_v6, %v326_v2 }
 0x125   : > { %1148 = vrsqrt.f32 %v381_v60  ;;  %v329_v8 = vsel %vm277_vm0, %v289_v62, %v309_v63 }
 0x126   : > { %v1137_v3 = vpop.eup %1136 }
 0x127   : > { %v327_v7 = vmul.f32 %v1137_v3, %v1202_v1  ;;  %v1139_v12 = vpop.eup %1138 }
 0x128   : > { %v1141_v1 = vpop.eup %1140  ;;  %v346_v21 = vmul.f32 %v1139_v12, %v1213_v4 }
 0x129   : > { %v332_v10 = vsel %vm330_vm2, %v329_v8, %v327_v7  ;;  %v366_v22 = vmul.f32 %v1141_v1, %v1213_v4 }
 0x12a   : > { %v333_v13 = vpack.c.bf16 %v332_v10, %v331_v9  ;;  %v1143_v16 = vpop.eup %1142 }
 0x12b   : > { %v1145_v18 = vpop.eup %1144  ;;  %v347_v23 = vmul.f32 %v1143_v16, %v1215_v5  ;;  %v386_v27 = vsel %vm277_vm0, %v346_v21, %v366_v22 }
 0x12c   : > { %1061 = vmatprep.subr.bf16.mxu1 %v333_v13  ;;  %v384_v25 = vmul.f32 %v1145_v18, %v1213_v4 }
 0x12d   : > { %1062 = vmatpush3.bf16.msra.mxu1 %v333_v13 }
 0x12e   : > { %v1147_v20 = vpop.eup %1146  ;;  %v388_v30 = vsel %vm330_vm2, %v386_v27, %v384_v25 }
 0x12f   : > { %v367_v24 = vmul.f32 %v1147_v20, %v1215_v5 }
 0x130   : > { %1064 = vmatmul.mubr.msk.bf16.vlgmr.msra.gmra.mxu1 %vm391_vm1, %v268_v17 }
 0x131   : > { %1069 = vmatprep.mubr.msk.bf16.mxu1 %vm391_vm1, %v273_v19  ;;  %v387_v29 = vsel %vm277_vm0, %v347_v23, %v367_v24 }
 0x132   : > { %v1149_v26 = vpop.eup %1148 }
 0x133   : > { %v385_v28 = vmul.f32 %v1149_v26, %v1215_v5 }
 0x135   : > { %v389_v31 = vsel %vm330_vm2, %v387_v29, %v385_v28 }
 0x136   : > { %v390_v34 = vpack.c.bf16 %v389_v31, %v388_v30 }
 0x138   : > { %1067 = vmatprep.subr.bf16.mxu1 %v390_v34 }
 0x139   : > { %1068 = vmatpush3.bf16.msra.mxu1 %v390_v34 }
 0x13c   : > { %1070 = vmatmul.mubr.msk.bf16.vlgmr.msra.gmra.mxu1 %vm391_vm1, %v274_v35 }
 0x1f0   : > { %v1065_v4 = vpop.f32.mrf.mxu1 }
 0x1f1   : > { %623 = vrot.lane.b32.xlu1 %v1065_v4, %s1158_s24 }
 0x1f2   : > { %v432_v36 = vpop.f32.mrf.mxu1 }
 0x1f3   : > { %619 = vrot.lane.b32.xlu0 %v432_v36, %s1158_s24 }
 0x1f4   : > { %v1066_v5 = vpop.f32.mrf.mxu1 }
 0x1f5   : > { %740 = vrot.lane.b32.xlu1 %v1065_v4, %s1159_s25  ;;  %1073 = vmatprep.subr.msk.mxu0 %vm277_vm0, %v1066_v5 }
 0x1f6   : > { %1074 = vmatpush3.xpose.msk.msra.mxu0 %vm277_vm0, %v1066_v5  ;;  %v435_v37 = vpop.f32.mrf.mxu1 }
 0x1f7   : > { %742 = vrot.lane.b32.xlu0 %v1066_v5, %s1159_s25  ;;  %1075 = vmatprep.subr.msk.mxu0 %vm277_vm0, %v1065_v4 }
 0x1f9   : > { %625 = vrot.lane.b32.xlu1 %v1066_v5, %s1158_s24 }
 0x1fa   : > { %1076 = vmatpush3.xpose.msk.msra.mxu0 %vm277_vm0, %v1065_v4 }
 0x1fb   : > { %621 = vrot.lane.b32.xlu0 %v435_v37, %s1158_s24  ;;  %1077 = vmatprep.subr.msk.mxu0 %vm277_vm0, %v435_v37 }
 0x1fc   : > { %v1071_v38 = vpop.f32.mrf.mxu1 }
 0x1fd   : > { %736 = vrot.lane.b32.xlu1 %v432_v36, %s1159_s25 }
 0x1fe   : > { %v487_v39 = vpop.f32.mrf.mxu1  ;;  %1078 = vmatpush3.xpose.msk.msra.mxu0 %vm277_vm0, %v435_v37 }
 0x1ff   : > { %1079 = vmatprep.subr.msk.mxu0 %vm277_vm0, %v432_v36  ;;  %615 = vrot.lane.b32.xlu0 %v1071_v38, %s1158_s24 }
 0x200   : > { %v1072_v40 = vpop.f32.mrf.mxu1  ;;  %1081 = vmatprep.mubr.msk.f32.mxu0 %vm277_vm0, %v487_v39 }
 0x201   : > { %738 = vrot.lane.b32.xlu1 %v435_v37, %s1159_s25 }
 0x202   : > { %1080 = vmatpush3.xpose.msk.msra.mxu0 %vm277_vm0, %v432_v36  ;;  %v490_v41 = vpop.f32.mrf.mxu1 }
 0x203   : > { %611 = vrot.lane.b32.xlu0 %v487_v39, %s1158_s24 }
 0x205   : > { %617 = vrot.lane.b32.xlu1 %v1072_v40, %s1158_s24  ;;  %1082 = vmatmul.mubr.msk.f32.vlgmr.msra.gmra.mxu0 %vm277_vm0, %v490_v41 }
 0x206   : > { %1084 = vmatprep.mubr.msk.f32.mxu0 %vm277_vm0, %v1071_v38 }
 0x207   : > { %728 = vrot.lane.b32.xlu0 %v487_v39, %s1159_s25 }
 0x209   : > { %613 = vrot.lane.b32.xlu1 %v490_v41, %s1158_s24  ;;  %1085 = vmatmul.mubr.msk.f32.gmra.mxu0 %vm277_vm0, %v1072_v40 }
 0x20b   : > { %732 = vrot.lane.b32.xlu0 %v1071_v38, %s1159_s25 }
 0x20d   : > { %730 = vrot.lane.b32.xlu1 %v490_v41, %s1159_s25 }
 0x211   : > { %734 = vrot.lane.b32.xlu1 %v1072_v40, %s1159_s25 }
 0x263   : > { %v624_v42 = vpop.permute.xlu1 %623 }
 0x265   : > { %v620_v43 = vpop.permute.xlu0 %619 }
 0x267   : > { %v741_v44 = vpop.permute.xlu1 %740 }
 0x269   : > { %v743_v45 = vpop.permute.xlu0 %742 }
 0x26a   : > { %1101 = vmatprep.subr.msk.mxu0 %vm277_vm0, %v743_v45 }
 0x26b   : > { %v626_v46 = vpop.permute.xlu1 %625  ;;  %1102 = vmatpush3.xpose.msk.msra.mxu0 %vm277_vm0, %v743_v45 }
 0x26c   : > { %1087 = vmatprep.subr.msk.mxu1 %vm277_vm0, %v626_v46  ;;  %1103 = vmatprep.subr.msk.mxu0 %vm277_vm0, %v741_v44 }
 0x26d   : > { %1088 = vmatpush3.xpose.msk.msra.mxu1 %vm277_vm0, %v626_v46  ;;  %v622_v47 = vpop.permute.xlu0 %621 }
 0x26e   : > { %1089 = vmatprep.subr.msk.mxu1 %vm277_vm0, %v624_v42 }
 0x26f   : > { %v737_v48 = vpop.permute.xlu1 %736  ;;  %1104 = vmatpush3.xpose.msk.msra.mxu0 %vm277_vm0, %v741_v44 }
 0x271   : > { %1090 = vmatpush3.xpose.msk.msra.mxu1 %vm277_vm0, %v624_v42  ;;  %v616_v49 = vpop.permute.xlu0 %615 }
 0x272   : > { %1091 = vmatprep.subr.msk.mxu1 %vm277_vm0, %v622_v47 }
 0x273   : > { %v739_v50 = vpop.permute.xlu1 %738 }
 0x274   : > { %1105 = vmatprep.subr.msk.mxu0 %vm277_vm0, %v739_v50 }
 0x275   : > { %1092 = vmatpush3.xpose.msk.msra.mxu1 %vm277_vm0, %v622_v47  ;;  %1106 = vmatpush3.xpose.msk.msra.mxu0 %vm277_vm0, %v739_v50  ;;  %v612_v51 = vpop.permute.xlu0 %611 }
 0x276   : > { %1093 = vmatprep.subr.msk.mxu1 %vm277_vm0, %v620_v43  ;;  %1095 = vmatprep.mubr.msk.f32.mxu1 %vm277_vm0, %v612_v51 }
 0x277   : > { %1107 = vmatprep.subr.msk.mxu0 %vm277_vm0, %v737_v48  ;;  %v618_v52 = vpop.permute.xlu1 %617 }
 0x279   : > { %1094 = vmatpush3.xpose.msk.msra.mxu1 %vm277_vm0, %v620_v43  ;;  %1108 = vmatpush3.xpose.msk.msra.mxu0 %vm277_vm0, %v737_v48  ;;  %v729_v53 = vpop.permute.xlu0 %728 }
 0x27a   : > { %1109 = vmatprep.mubr.msk.f32.mxu0 %vm277_vm0, %v729_v53 }
 0x27b   : > { %v614_v54 = vpop.permute.xlu1 %613 }
 0x27c   : > { %1096 = vmatmul.mubr.msk.f32.vlgmr.msra.gmra.mxu1 %vm277_vm0, %v614_v54 }
 0x27d   : > { %1098 = vmatprep.mubr.msk.f32.mxu1 %vm277_vm0, %v616_v49  ;;  %v733_v56 = vpop.permute.xlu0 %732 }
 0x27f   : > { %v731_v55 = vpop.permute.xlu1 %730 }
 0x280   : > { %1099 = vmatmul.mubr.msk.f32.gmra.mxu1 %vm277_vm0, %v618_v52  ;;  %1110 = vmatmul.mubr.msk.f32.vlgmr.msra.gmra.mxu0 %vm277_vm0, %v731_v55 }
 0x281   : > { %1112 = vmatprep.mubr.msk.f32.mxu0 %vm277_vm0, %v733_v56 }
 0x283   : > { %v735_v57 = vpop.permute.xlu1 %734 }
 0x284   : > { %1113 = vmatmul.mubr.msk.f32.gmra.mxu0 %vm277_vm0, %v735_v57 }
 0x2c5   : > { %v1083_v58 = vpop.f32.mrf.mxu0 }
 0x2c7   : > { %v592_v59 = vpop.f32.mrf.mxu0 }
 0x2c9   : > { %v1086_v60 = vpop.f32.mrf.mxu0 }
 0x2cb   : > { %v602_v62 = vpop.f32.mrf.mxu0 }
 0x33c   : > { %v1097_v61 = vpop.f32.mrf.mxu1 }
 0x33d   : > { %851 = vrot.lane.b32.xlu1 %v1097_v61, %s1160_s7 }
 0x33e   : > { %v709_v63 = vpop.f32.mrf.mxu1 }
 0x33f   : > { %849 = vrot.lane.b32.xlu0 %v709_v63, %s1160_s7 }
 0x340   : > { %v1111_v2 = vpop.f32.mrf.mxu0  ;;  %v1100_v3 = vpop.f32.mrf.mxu1 }
 0x341   : > { %867 = vrot.lane.b32.xlu1 %v1111_v2, %s1159_s25 }
 0x342   : > { %v826_v6 = vpop.f32.mrf.mxu0  ;;  %v719_v7 = vpop.f32.mrf.mxu1 }
 0x343   : > { %865 = vrot.lane.b32.xlu0 %v826_v6, %s1159_s25 }
 0x344   : > { %v1114_v8 = vpop.f32.mrf.mxu0 }
 0x345   : > { %855 = vrot.lane.b32.xlu1 %v1100_v3, %s1160_s7 }
 0x346   : > { %v836_v9 = vpop.f32.mrf.mxu0 }
 0x347   : > { %853 = vrot.lane.b32.xlu0 %v719_v7, %s1160_s7 }
 0x349   : > { %871 = vrot.lane.b32.xlu1 %v1114_v8, %s1159_s25 }
 0x34b   : > { %869 = vrot.lane.b32.xlu0 %v836_v9, %s1159_s25 }
 0x3af   : > { %v852_v10 = vpop.permute.xlu1 %851 }
 0x3b0   : > { %v878_v11 = vsel %vm277_vm0, %v1083_v58, %v852_v10 }
 0x3b1   : > { %v850_v0 = vpop.permute.xlu0 %849 }
 0x3b2   : > { %v877_v14 = vsel %vm277_vm0, %v592_v59, %v850_v0 }
 0x3b3   : > { %v868_v12 = vpop.permute.xlu1 %867 }
 0x3b4   : > { %v882_v13 = vsel %vm330_vm2, %v878_v11, %v868_v12 }
 0x3b5   : > { %887 = vst.msk [vmem:[%s257_s10 + $0x8] sm:$0xff] %vm885_vm3, %v882_v13  ;;  %v866_v15 = vpop.permute.xlu0 %865 }
 0x3b6   : > { %v881_v1 = vsel %vm330_vm2, %v877_v14, %v866_v15 }
 0x3b7   : > { %886 = vst.msk [vmem:[%s257_s10] sm:$0xff] %vm885_vm3, %v881_v1  ;;  %v856_v16 = vpop.permute.xlu1 %855 }
 0x3b8   : > { %v880_v18 = vsel %vm277_vm0, %v1086_v60, %v856_v16 }
 0x3b9   : > { %v854_v17 = vpop.permute.xlu0 %853 }
 0x3ba   : > { %v879_v21 = vsel %vm277_vm0, %v602_v62, %v854_v17 }
 0x3bb   : > { %v872_v19 = vpop.permute.xlu1 %871 }
 0x3bc   : > { %v884_v20 = vsel %vm330_vm2, %v880_v18, %v872_v19 }
 0x3bd   : > { %889 = vst.msk [vmem:[%s257_s10 + $0x18] sm:$0xff] %vm885_vm3, %v884_v20  ;;  %v870_v22 = vpop.permute.xlu0 %869 }
 0x3be   : > { %v883_v23 = vsel %vm330_vm2, %v879_v21, %v870_v22 }
 0x3bf   : > { %888 = vst.msk [vmem:[%s257_s10 + $0x10] sm:$0xff] %vm885_vm3, %v883_v23 }
 0x3c0 PF: > { %s14_s15 = sadd.s32 1, %s1156_s15  }
 0x3c1   : > { %p11_p4 = scmp.ge.s32.totalorder %s14_s15, 4  }
 0x3c3   :  { %13 = sbr.rel (!%p11_p4) target bundleno = 1 (0x1), region = 75 }

</bundles_post_ra>
